<compile_context>
chip_gen: v5e
topology: v5e:2x2
jax: 0.10.0
libtpu: 0.0.40
codegen_flags: <defaults>
</compile_context>

<pallas_src>
import jax
import jax.numpy as jnp
from jax.experimental import pallas as pl
from jax.experimental.pallas import tpu as pltpu

T = 1.0       # distillation temperature (self.T)
ALPHA = 0.5   # loss mixing weight (self.alpha)
EPS = 1e-7    # 10 ** (-7) added to teacher softmax outputs


def distill_partial_kernel(s_ref, p_ref, n_ref, m_ref, l_ref,
                           kl_ref, pp_ref, ce_ref):
    """Accumulates per-batch masked sums over one (batch, seq-tile) block.

    Inputs:  s/p/n -> [1, TS, V] logits, m -> [1, TS, 1] f32 mask, l -> [1, TS, 1] i32 labels.
    Outputs: kl/pp/ce -> [1, 1, 128] per-batch running sums (value splat across lanes).
    """
    s_idx = pl.program_id(1)

    @pl.when(s_idx == 0)
    def _init():
        kl_ref[...] = jnp.zeros_like(kl_ref)
        pp_ref[...] = jnp.zeros_like(pp_ref)
        ce_ref[...] = jnp.zeros_like(ce_ref)

    inv_t = 1.0 / T
    s = s_ref[0].astype(jnp.float32) * inv_t      # [TS, V] student logits / T
    p = p_ref[0].astype(jnp.float32) * inv_t      # pos teacher ('mix') logits / T
    n = n_ref[0].astype(jnp.float32) * inv_t      # neg teacher ('neg') logits / T
    mask = m_ref[0]                               # [TS, 1] f32
    labels = l_ref[0]                             # [TS, 1] i32
    ts, v = s.shape

    # Student: a single exp; keep z and logZ — full log-softmax never materialized.
    zs = s - jnp.max(s, axis=-1, keepdims=True)
    log_zs = jnp.log(jnp.sum(jnp.exp(zs), axis=-1, keepdims=True))     # [TS, 1]

    # Pos teacher: a single exp; softmax = exp * reciprocal(row sum) (EUP slot).
    zp = p - jnp.max(p, axis=-1, keepdims=True)
    ep = jnp.exp(zp)
    sum_ep = jnp.sum(ep, axis=-1, keepdims=True)                        # [TS, 1]
    inv_p = pl.reciprocal(sum_ep, approx=True)
    pos_log = zp - jnp.log(sum_ep)                # F.log_softmax(pos / T)
    pos_out = ep * inv_p + EPS                    # F.softmax(pos / T) + 1e-7

    # Neg teacher: one exp + the one log(softmax + eps) the reference requires.
    zn = n - jnp.max(n, axis=-1, keepdims=True)
    en = jnp.exp(zn)
    inv_n = pl.reciprocal(jnp.sum(en, axis=-1, keepdims=True), approx=True)
    neg_out = en * inv_n + EPS                    # F.softmax(neg / T) + 1e-7

    # F.kl_div(pos_log, neg_out, reduction='none') = neg_out * (log(neg_out) - pos_log)
    kl = neg_out * (jnp.log(neg_out) - pos_log)
    part_kl = jnp.sum(kl * mask)

    # sum_v pred*pos_out = sum_v zs*pos_out - logZ_s * sum_v pos_out   (pred never built)
    row_pos_sum = sum_ep * inv_p + v * EPS        # == sum_v pos_out, no extra [TS,V] reduce
    row_pp = jnp.sum(zs * pos_out, axis=-1, keepdims=True) - log_zs * row_pos_sum
    part_pp = jnp.sum(row_pp * mask)

    # Surrogate CE: -log_softmax(s)[label] = logZ_s - zs[label]; labels < 0 (HF
    # ignore_index=-100) contribute 0.
    # TODO(synk): the real loss_ce comes from the black-box student LLM forward.
    vocab_ids = jax.lax.broadcasted_iota(jnp.int32, (ts, v), 1)
    z_at_label = jnp.sum(jnp.where(vocab_ids == labels, zs, 0.0),
                         axis=-1, keepdims=True)
    valid = (labels >= 0).astype(jnp.float32)
    part_ce = jnp.sum((log_zs - z_at_label) * valid * mask)

    kl_ref[...] = kl_ref[...] + part_kl
    pp_ref[...] = pp_ref[...] + part_pp
    ce_ref[...] = ce_ref[...] + part_ce


def _choose_s_tile(S, V, itemsize, vmem_budget_bytes=40 * 1024 * 1024):
    """Largest multiple-of-8 divisor of S whose 3x2 pipeline buffers fit the budget."""
    if S % 8 != 0:
        return S  # block must equal full dim when S isn't sublane-aligned
    max_rows = max(8, vmem_budget_bytes // (6 * V * itemsize))
    ts = 8
    for cand in range(8, min(S, max_rows) + 1, 8):
        if S % cand == 0:
            ts = cand
    return ts


def distill_forward(student_logits, pos_logits, neg_logits, attention_mask, labels,
                    *, s_tile=None):
    B, S, V = student_logits.shape
    itemsize = jnp.dtype(student_logits.dtype).itemsize
    if s_tile is None:
        s_tile = _choose_s_tile(S, V, itemsize)
    if S % s_tile != 0:
        raise ValueError(f"s_tile={s_tile} must divide S={S}")
    ns = S // s_tile

    mask3 = attention_mask.astype(jnp.float32)[..., None]   # [B, S, 1]
    labels3 = labels.astype(jnp.int32)[..., None]            # [B, S, 1]

    # 3 logits inputs x 2 pipeline buffers + headroom; stays under v7x's 64 MiB.
    vmem_limit = int(min(100 * 1024 * 1024,
                         6 * s_tile * V * itemsize + 8 * 1024 * 1024))

    kl_sums, pp_sums, ce_sums = pl.pallas_call(
        distill_partial_kernel,
        out_shape=(
            jax.ShapeDtypeStruct((B, 1, 128), jnp.float32),
            jax.ShapeDtypeStruct((B, 1, 128), jnp.float32),
            jax.ShapeDtypeStruct((B, 1, 128), jnp.float32),
        ),
        grid_spec=pltpu.PrefetchScalarGridSpec(
            num_scalar_prefetch=0,
            grid=(B, ns),
            in_specs=[
                pl.BlockSpec((1, s_tile, V), lambda b, s: (b, s, 0)),
                pl.BlockSpec((1, s_tile, V), lambda b, s: (b, s, 0)),
                pl.BlockSpec((1, s_tile, V), lambda b, s: (b, s, 0)),
                pl.BlockSpec((1, s_tile, 1), lambda b, s: (b, s, 0)),
                pl.BlockSpec((1, s_tile, 1), lambda b, s: (b, s, 0)),
            ],
            out_specs=(
                pl.BlockSpec((1, 1, 128), lambda b, s: (b, 0, 0)),
                pl.BlockSpec((1, 1, 128), lambda b, s: (b, 0, 0)),
                pl.BlockSpec((1, 1, 128), lambda b, s: (b, 0, 0)),
            ),
        ),
        compiler_params=pltpu.CompilerParams(
            dimension_semantics=("parallel", "arbitrary"),
            vmem_limit_bytes=vmem_limit,
        ),
    )(student_logits, pos_logits, neg_logits, mask3, labels3)

    kl_b = kl_sums[:, 0, 0]   # per-batch masked sum of KL term
    pp_b = pp_sums[:, 0, 0]   # per-batch masked sum of pred*pos_out
    ce_b = ce_sums[:, 0, 0]   # per-batch masked sum of token NLL

    mask_f = attention_mask.astype(jnp.float32)
    per_batch_mask = jnp.maximum(mask_f.sum(-1), 1e-6)     # guard fully-masked rows
    mask_total = jnp.maximum(mask_f.sum(), 1e-6)

    beta = jnp.tanh(kl_b / per_batch_mask)                  # [B]
    loss_kd = jnp.sum(-(T * T) * (0.5 + beta) * pp_b) / mask_total
    loss_ce = jnp.sum(ce_b) / mask_total
    loss = (1.0 - ALPHA) * loss_ce + ALPHA * loss_kd

    # Mirror student_outputs dict with the blended loss written back.
    return {"loss": loss, "logits": student_logits,
            "loss_ce": loss_ce, "loss_kd": loss_kd}


def distill_reference(student_logits, pos_logits, neg_logits, attention_mask, labels):
    """Pure-JAX reference mirroring the PyTorch forward math (f32 compute)."""
    s = student_logits.astype(jnp.float32)
    p = pos_logits.astype(jnp.float32)
    n = neg_logits.astype(jnp.float32)
    mask = attention_mask.astype(jnp.float32)
    pred = jax.nn.log_softmax(s / T, axis=-1)
    pos_log = jax.nn.log_softmax(p / T, axis=-1)
    pos_out = jax.nn.softmax(p / T, axis=-1) + EPS
    neg_out = jax.nn.softmax(n / T, axis=-1) + EPS
    kl = neg_out * (jnp.log(neg_out) - pos_log)
    beta = jnp.tanh((kl * mask[..., None]).sum((-1, -2)) / mask.sum(-1))
    loss_kd = -(T * T) * pred * pos_out * (0.5 + beta[:, None, None])
    loss_kd = (loss_kd * mask[..., None]).sum() / mask.sum()
    ce = -jnp.take_along_axis(pred, labels[..., None], axis=-1)[..., 0]
    loss_ce = (ce * mask).sum() / mask.sum()
    return (1.0 - ALPHA) * loss_ce + ALPHA * loss_kd


if __name__ == "__main__":
    B, S, V = 2, 16, 256
    key = jax.random.PRNGKey(0)
    k1, k2, k3, k4 = jax.random.split(key, 4)

    # TODO(synk): student_model / teacher_model (32-layer LoRA LLM with 'mix'/'neg'
    # q_proj/v_proj modes) are external black boxes; their logits are synthesized
    # here in bf16 (the model's native dtype) — the kernel casts to f32 internally.
    student_logits = jax.random.normal(k1, (B, S, V), dtype=jnp.float32).astype(jnp.bfloat16)
    pos_teacher_logits = jax.random.normal(k2, (B, S, V), dtype=jnp.float32).astype(jnp.bfloat16)  # cur_mode='mix'
    neg_teacher_logits = jax.random.normal(k3, (B, S, V), dtype=jnp.float32).astype(jnp.bfloat16)  # cur_mode='neg'
    labels = jax.random.randint(k4, (B, S), 0, V, dtype=jnp.int32)
    attention_mask = jnp.array([[1.0] * S, [1.0] * (S - 3) + [0.0] * 3], dtype=jnp.float32)

    # s_tile=8 forces two sequence tiles per batch to exercise the accumulation path.
    out = distill_forward(student_logits, pos_teacher_logits, neg_teacher_logits,
                          attention_mask, labels, s_tile=8)
    loss = jax.block_until_ready(out["loss"])

    ref = distill_reference(student_logits, pos_teacher_logits, neg_teacher_logits,
                            attention_mask, labels)
    lf, rf = float(loss), float(ref)
    # Tolerance covers the approx-reciprocal softmax denominator (EUP vrcp).
    assert abs(lf - rf) < max(5e-2, 5e-3 * abs(rf)), (lf, rf)
    print("KERNEL_OK")
</pallas_src>

<mosaic_0001>
module attributes {stable_mosaic.version = 11 : i64} {
  func.func @distill_partial_kernel(%arg0: i32, %arg1: i32, %arg2: memref<1x8x256xbf16, #tpu.memory_space<vmem>>, %arg3: memref<1x8x256xbf16, #tpu.memory_space<vmem>>, %arg4: memref<1x8x256xbf16, #tpu.memory_space<vmem>>, %arg5: memref<1x8x1xf32, #tpu.memory_space<vmem>>, %arg6: memref<1x8x1xi32, #tpu.memory_space<vmem>>, %arg7: memref<1x1x128xf32, #tpu.memory_space<vmem>>, %arg8: memref<1x1x128xf32, #tpu.memory_space<vmem>>, %arg9: memref<1x1x128xf32, #tpu.memory_space<vmem>>) attributes {dimension_semantics = [#tpu.dimension_semantics<parallel>, #tpu.dimension_semantics<arbitrary>], iteration_bounds = array<i64: 2, 2>, scalar_prefetch = 0 : i64, scratch_operands = 0 : i64, tpu.core_type = #tpu.core_type<tc>, window_params = [{transform_indices = @transform_0, window_bounds = array<i64: 1, 8, 256>}, {transform_indices = @transform_1, window_bounds = array<i64: 1, 8, 256>}, {transform_indices = @transform_2, window_bounds = array<i64: 1, 8, 256>}, {transform_indices = @transform_3, window_bounds = array<i64: 1, 8, 1>}, {transform_indices = @transform_4, window_bounds = array<i64: 1, 8, 1>}, {transform_indices = @transform_5, window_bounds = array<i64: 1, 1, 128>}, {transform_indices = @transform_6, window_bounds = array<i64: 1, 1, 128>}, {transform_indices = @transform_7, window_bounds = array<i64: 1, 1, 128>}]} {
    %c0_i32 = arith.constant 0 : i32
    %0 = arith.cmpi eq, %arg1, %c0_i32 : i32
    %1 = arith.extui %0 : i1 to i32
    %c0_i32_0 = arith.constant 0 : i32
    %2 = arith.cmpi ne, %1, %c0_i32_0 : i32
    scf.if %2 {
      %cst_51 = arith.constant 0.000000e+00 : f32
      %109 = vector.broadcast %cst_51 : f32 to vector<1x1x128xf32>
      %c0_52 = arith.constant 0 : index
      %c0_53 = arith.constant 0 : index
      %c0_54 = arith.constant 0 : index
      %110 = vector.load %arg7[%c0_52, %c0_53, %c0_54] : memref<1x1x128xf32, #tpu.memory_space<vmem>>, vector<1x1x128xf32>
      tpu.vector_store %arg7[%c0_52, %c0_53, %c0_54], %109 {strides = array<i32>} : memref<1x1x128xf32, #tpu.memory_space<vmem>>, vector<1x1x128xf32>,
      %cst_55 = arith.constant 0.000000e+00 : f32
      %111 = vector.broadcast %cst_55 : f32 to vector<1x1x128xf32>
      %c0_56 = arith.constant 0 : index
      %c0_57 = arith.constant 0 : index
      %c0_58 = arith.constant 0 : index
      %112 = vector.load %arg8[%c0_56, %c0_57, %c0_58] : memref<1x1x128xf32, #tpu.memory_space<vmem>>, vector<1x1x128xf32>
      tpu.vector_store %arg8[%c0_56, %c0_57, %c0_58], %111 {strides = array<i32>} : memref<1x1x128xf32, #tpu.memory_space<vmem>>, vector<1x1x128xf32>,
      %cst_59 = arith.constant 0.000000e+00 : f32
      %113 = vector.broadcast %cst_59 : f32 to vector<1x1x128xf32>
      %c0_60 = arith.constant 0 : index
      %c0_61 = arith.constant 0 : index
      %c0_62 = arith.constant 0 : index
      %114 = vector.load %arg9[%c0_60, %c0_61, %c0_62] : memref<1x1x128xf32, #tpu.memory_space<vmem>>, vector<1x1x128xf32>
      tpu.vector_store %arg9[%c0_60, %c0_61, %c0_62], %113 {strides = array<i32>} : memref<1x1x128xf32, #tpu.memory_space<vmem>>, vector<1x1x128xf32>,
    } else {
    }
    %c0 = arith.constant 0 : index
    %c0_1 = arith.constant 0 : index
    %c0_2 = arith.constant 0 : index
    %3 = vector.load %arg2[%c0, %c0_1, %c0_2] : memref<1x8x256xbf16, #tpu.memory_space<vmem>>, vector<1x8x256xbf16>
    %4 = vector.shape_cast %3 : vector<1x8x256xbf16> to vector<8x256xbf16>
    %5 = arith.extf %4 : vector<8x256xbf16> to vector<8x256xf32>
    %cst = arith.constant 1.000000e+00 : f32
    %6 = vector.broadcast %cst : f32 to vector<8x256xf32>
    %7 = arith.mulf %5, %6 : vector<8x256xf32>
    %c0_3 = arith.constant 0 : index
    %c0_4 = arith.constant 0 : index
    %c0_5 = arith.constant 0 : index
    %8 = vector.load %arg3[%c0_3, %c0_4, %c0_5] : memref<1x8x256xbf16, #tpu.memory_space<vmem>>, vector<1x8x256xbf16>
    %9 = vector.shape_cast %8 : vector<1x8x256xbf16> to vector<8x256xbf16>
    %10 = arith.extf %9 : vector<8x256xbf16> to vector<8x256xf32>
    %cst_6 = arith.constant 1.000000e+00 : f32
    %11 = vector.broadcast %cst_6 : f32 to vector<8x256xf32>
    %12 = arith.mulf %10, %11 : vector<8x256xf32>
    %c0_7 = arith.constant 0 : index
    %c0_8 = arith.constant 0 : index
    %c0_9 = arith.constant 0 : index
    %13 = vector.load %arg4[%c0_7, %c0_8, %c0_9] : memref<1x8x256xbf16, #tpu.memory_space<vmem>>, vector<1x8x256xbf16>
    %14 = vector.shape_cast %13 : vector<1x8x256xbf16> to vector<8x256xbf16>
    %15 = arith.extf %14 : vector<8x256xbf16> to vector<8x256xf32>
    %cst_10 = arith.constant 1.000000e+00 : f32
    %16 = vector.broadcast %cst_10 : f32 to vector<8x256xf32>
    %17 = arith.mulf %15, %16 : vector<8x256xf32>
    %c0_11 = arith.constant 0 : index
    %c0_12 = arith.constant 0 : index
    %c0_13 = arith.constant 0 : index
    %18 = vector.load %arg5[%c0_11, %c0_12, %c0_13] : memref<1x8x1xf32, #tpu.memory_space<vmem>>, vector<1x8x1xf32>
    %19 = vector.shape_cast %18 : vector<1x8x1xf32> to vector<8x1xf32>
    %c0_14 = arith.constant 0 : index
    %c0_15 = arith.constant 0 : index
    %c0_16 = arith.constant 0 : index
    %20 = vector.load %arg6[%c0_14, %c0_15, %c0_16] : memref<1x8x1xi32, #tpu.memory_space<vmem>>, vector<1x8x1xi32>
    %21 = vector.shape_cast %20 : vector<1x8x1xi32> to vector<8x1xi32>
    %cst_17 = arith.constant dense<0xFF800000> : vector<8xf32>
    %22 = vector.multi_reduction <maximumf>, %7, %cst_17 [1] : vector<8x256xf32> to vector<8xf32>
    %23 = vector.shape_cast %22 : vector<8xf32> to vector<8x1xf32>
    %24 = vector.broadcast %23 : vector<8x1xf32> to vector<8x256xf32>
    %25 = arith.subf %7, %24 : vector<8x256xf32>
    %26 = math.exp %25 : vector<8x256xf32>
    %cst_18 = arith.constant dense<0.000000e+00> : vector<8xf32>
    %27 = vector.multi_reduction <add>, %26, %cst_18 [1] : vector<8x256xf32> to vector<8xf32>
    %28 = vector.shape_cast %27 : vector<8xf32> to vector<8x1xf32>
    %29 = math.log %28 : vector<8x1xf32>
    %cst_19 = arith.constant dense<0xFF800000> : vector<8xf32>
    %30 = vector.multi_reduction <maximumf>, %12, %cst_19 [1] : vector<8x256xf32> to vector<8xf32>
    %31 = vector.shape_cast %30 : vector<8xf32> to vector<8x1xf32>
    %32 = vector.broadcast %31 : vector<8x1xf32> to vector<8x256xf32>
    %33 = arith.subf %12, %32 : vector<8x256xf32>
    %34 = math.exp %33 : vector<8x256xf32>
    %cst_20 = arith.constant dense<0.000000e+00> : vector<8xf32>
    %35 = vector.multi_reduction <add>, %34, %cst_20 [1] : vector<8x256xf32> to vector<8xf32>
    %36 = vector.shape_cast %35 : vector<8xf32> to vector<8x1xf32>
    %37 = tpu.reciprocal %36 {approx = true} : vector<8x1xf32> -> vector<8x1xf32>
    %38 = math.log %36 : vector<8x1xf32>
    %39 = vector.broadcast %38 : vector<8x1xf32> to vector<8x256xf32>
    %40 = arith.subf %33, %39 : vector<8x256xf32>
    %41 = vector.broadcast %37 : vector<8x1xf32> to vector<8x256xf32>
    %42 = arith.mulf %34, %41 : vector<8x256xf32>
    %cst_21 = arith.constant 1.000000e-07 : f32
    %43 = vector.broadcast %cst_21 : f32 to vector<8x256xf32>
    %44 = arith.addf %42, %43 : vector<8x256xf32>
    %cst_22 = arith.constant dense<0xFF800000> : vector<8xf32>
    %45 = vector.multi_reduction <maximumf>, %17, %cst_22 [1] : vector<8x256xf32> to vector<8xf32>
    %46 = vector.shape_cast %45 : vector<8xf32> to vector<8x1xf32>
    %47 = vector.broadcast %46 : vector<8x1xf32> to vector<8x256xf32>
    %48 = arith.subf %17, %47 : vector<8x256xf32>
    %49 = math.exp %48 : vector<8x256xf32>
    %cst_23 = arith.constant dense<0.000000e+00> : vector<8xf32>
    %50 = vector.multi_reduction <add>, %49, %cst_23 [1] : vector<8x256xf32> to vector<8xf32>
    %51 = vector.shape_cast %50 : vector<8xf32> to vector<8x1xf32>
    %52 = tpu.reciprocal %51 {approx = true} : vector<8x1xf32> -> vector<8x1xf32>
    %53 = vector.broadcast %52 : vector<8x1xf32> to vector<8x256xf32>
    %54 = arith.mulf %49, %53 : vector<8x256xf32>
    %cst_24 = arith.constant 1.000000e-07 : f32
    %55 = vector.broadcast %cst_24 : f32 to vector<8x256xf32>
    %56 = arith.addf %54, %55 : vector<8x256xf32>
    %57 = math.log %56 : vector<8x256xf32>
    %58 = arith.subf %57, %40 : vector<8x256xf32>
    %59 = arith.mulf %56, %58 : vector<8x256xf32>
    %60 = vector.broadcast %19 : vector<8x1xf32> to vector<8x256xf32>
    %61 = arith.mulf %59, %60 : vector<8x256xf32>
    %62 = vector.shape_cast %61 : vector<8x256xf32> to vector<1x8x256xf32>
    %cst_25 = arith.constant dense<0.000000e+00> : vector<1xf32>
    %63 = vector.multi_reduction <add>, %62, %cst_25 [1, 2] : vector<1x8x256xf32> to vector<1xf32>
    %64 = vector.shape_cast %63 : vector<1xf32> to vector<1x1x1xf32>
    %65 = vector.extract %64[0, 0, 0] : f32 from vector<1x1x1xf32>
    %66 = arith.mulf %36, %37 : vector<8x1xf32>
    %cst_26 = arith.constant 2.560000e-05 : f32
    %67 = vector.broadcast %cst_26 : f32 to vector<8x1xf32>
    %68 = arith.addf %66, %67 : vector<8x1xf32>
    %69 = arith.mulf %25, %44 : vector<8x256xf32>
    %cst_27 = arith.constant dense<0.000000e+00> : vector<8xf32>
    %70 = vector.multi_reduction <add>, %69, %cst_27 [1] : vector<8x256xf32> to vector<8xf32>
    %71 = vector.shape_cast %70 : vector<8xf32> to vector<8x1xf32>
    %72 = arith.mulf %29, %68 : vector<8x1xf32>
    %73 = arith.subf %71, %72 : vector<8x1xf32>
    %74 = arith.mulf %73, %19 : vector<8x1xf32>
    %75 = vector.shape_cast %74 : vector<8x1xf32> to vector<1x8x1xf32>
    %cst_28 = arith.constant dense<0.000000e+00> : vector<1xf32>
    %76 = vector.multi_reduction <add>, %75, %cst_28 [1, 2] : vector<1x8x1xf32> to vector<1xf32>
    %77 = vector.shape_cast %76 : vector<1xf32> to vector<1x1x1xf32>
    %78 = vector.extract %77[0, 0, 0] : f32 from vector<1x1x1xf32>
    %79 = tpu.iota {dimensions = array<i32: 1>} : vector<8x256xi32>
    %80 = vector.broadcast %21 : vector<8x1xi32> to vector<8x256xi32>
    %81 = arith.cmpi eq, %79, %80 : vector<8x256xi32>
    %cst_29 = arith.constant 0.000000e+00 : f32
    %82 = vector.broadcast %cst_29 : f32 to vector<8x256xf32>
    %83 = arith.select %81, %25, %82 : vector<8x256xi1>, vector<8x256xf32>
    %cst_30 = arith.constant dense<0.000000e+00> : vector<8xf32>
    %84 = vector.multi_reduction <add>, %83, %cst_30 [1] : vector<8x256xf32> to vector<8xf32>
    %85 = vector.shape_cast %84 : vector<8xf32> to vector<8x1xf32>
    %c0_i32_31 = arith.constant 0 : i32
    %86 = vector.broadcast %c0_i32_31 : i32 to vector<8x1xi32>
    %87 = arith.cmpi sge, %21, %86 : vector<8x1xi32>
    %88 = arith.extui %87 : vector<8x1xi1> to vector<8x1xi32>
    %89 = arith.sitofp %88 : vector<8x1xi32> to vector<8x1xf32>
    %90 = arith.subf %29, %85 : vector<8x1xf32>
    %91 = arith.mulf %90, %89 : vector<8x1xf32>
    %92 = arith.mulf %91, %19 : vector<8x1xf32>
    %93 = vector.shape_cast %92 : vector<8x1xf32> to vector<1x8x1xf32>
    %cst_32 = arith.constant dense<0.000000e+00> : vector<1xf32>
    %94 = vector.multi_reduction <add>, %93, %cst_32 [1, 2] : vector<1x8x1xf32> to vector<1xf32>
    %95 = vector.shape_cast %94 : vector<1xf32> to vector<1x1x1xf32>
    %96 = vector.extract %95[0, 0, 0] : f32 from vector<1x1x1xf32>
    %c0_33 = arith.constant 0 : index
    %c0_34 = arith.constant 0 : index
    %c0_35 = arith.constant 0 : index
    %97 = vector.load %arg7[%c0_33, %c0_34, %c0_35] : memref<1x1x128xf32, #tpu.memory_space<vmem>>, vector<1x1x128xf32>
    %98 = vector.broadcast %65 : f32 to vector<1x1x128xf32>
    %99 = arith.addf %97, %98 : vector<1x1x128xf32>
    %c0_36 = arith.constant 0 : index
    %c0_37 = arith.constant 0 : index
    %c0_38 = arith.constant 0 : index
    %100 = vector.load %arg7[%c0_36, %c0_37, %c0_38] : memref<1x1x128xf32, #tpu.memory_space<vmem>>, vector<1x1x128xf32>
    tpu.vector_store %arg7[%c0_36, %c0_37, %c0_38], %99 {strides = array<i32>} : memref<1x1x128xf32, #tpu.memory_space<vmem>>, vector<1x1x128xf32>,
    %c0_39 = arith.constant 0 : index
    %c0_40 = arith.constant 0 : index
    %c0_41 = arith.constant 0 : index
    %101 = vector.load %arg8[%c0_39, %c0_40, %c0_41] : memref<1x1x128xf32, #tpu.memory_space<vmem>>, vector<1x1x128xf32>
    %102 = vector.broadcast %78 : f32 to vector<1x1x128xf32>
    %103 = arith.addf %101, %102 : vector<1x1x128xf32>
    %c0_42 = arith.constant 0 : index
    %c0_43 = arith.constant 0 : index
    %c0_44 = arith.constant 0 : index
    %104 = vector.load %arg8[%c0_42, %c0_43, %c0_44] : memref<1x1x128xf32, #tpu.memory_space<vmem>>, vector<1x1x128xf32>
    tpu.vector_store %arg8[%c0_42, %c0_43, %c0_44], %103 {strides = array<i32>} : memref<1x1x128xf32, #tpu.memory_space<vmem>>, vector<1x1x128xf32>,
    %c0_45 = arith.constant 0 : index
    %c0_46 = arith.constant 0 : index
    %c0_47 = arith.constant 0 : index
    %105 = vector.load %arg9[%c0_45, %c0_46, %c0_47] : memref<1x1x128xf32, #tpu.memory_space<vmem>>, vector<1x1x128xf32>
    %106 = vector.broadcast %96 : f32 to vector<1x1x128xf32>
    %107 = arith.addf %105, %106 : vector<1x1x128xf32>
    %c0_48 = arith.constant 0 : index
    %c0_49 = arith.constant 0 : index
    %c0_50 = arith.constant 0 : index
    %108 = vector.load %arg9[%c0_48, %c0_49, %c0_50] : memref<1x1x128xf32, #tpu.memory_space<vmem>>, vector<1x1x128xf32>
    tpu.vector_store %arg9[%c0_48, %c0_49, %c0_50], %107 {strides = array<i32>} : memref<1x1x128xf32, #tpu.memory_space<vmem>>, vector<1x1x128xf32>,
    return
  }
  func.func @transform_0(%arg0: i32, %arg1: i32) -> (i32, i32, i32) {
    %c0_i32 = arith.constant 0 : i32
    %c0_i32_0 = arith.constant 0 : i32
    return %arg0, %arg1, %c0_i32 : i32, i32, i32
  }
  func.func @transform_1(%arg0: i32, %arg1: i32) -> (i32, i32, i32) {
    %c0_i32 = arith.constant 0 : i32
    %c0_i32_0 = arith.constant 0 : i32
    return %arg0, %arg1, %c0_i32 : i32, i32, i32
  }
  func.func @transform_2(%arg0: i32, %arg1: i32) -> (i32, i32, i32) {
    %c0_i32 = arith.constant 0 : i32
    %c0_i32_0 = arith.constant 0 : i32
    return %arg0, %arg1, %c0_i32 : i32, i32, i32
  }
  func.func @transform_3(%arg0: i32, %arg1: i32) -> (i32, i32, i32) {
    %c0_i32 = arith.constant 0 : i32
    %c0_i32_0 = arith.constant 0 : i32
    return %arg0, %arg1, %c0_i32 : i32, i32, i32
  }
  func.func @transform_4(%arg0: i32, %arg1: i32) -> (i32, i32, i32) {
    %c0_i32 = arith.constant 0 : i32
    %c0_i32_0 = arith.constant 0 : i32
    return %arg0, %arg1, %c0_i32 : i32, i32, i32
  }
  func.func @transform_5(%arg0: i32, %arg1: i32) -> (i32, i32, i32) {
    %c0_i32 = arith.constant 0 : i32
    %c0_i32_0 = arith.constant 0 : i32
    %c0_i32_1 = arith.constant 0 : i32
    return %arg0, %c0_i32, %c0_i32_0 : i32, i32, i32
  }
  func.func @transform_6(%arg0: i32, %arg1: i32) -> (i32, i32, i32) {
    %c0_i32 = arith.constant 0 : i32
    %c0_i32_0 = arith.constant 0 : i32
    %c0_i32_1 = arith.constant 0 : i32
    return %arg0, %c0_i32, %c0_i32_0 : i32, i32, i32
  }
  func.func @transform_7(%arg0: i32, %arg1: i32) -> (i32, i32, i32) {
    %c0_i32 = arith.constant 0 : i32
    %c0_i32_0 = arith.constant 0 : i32
    %c0_i32_1 = arith.constant 0 : i32
    return %arg0, %c0_i32, %c0_i32_0 : i32, i32, i32
  }
}

</mosaic_0001>

<bundles_post_ra>
// kernel: tpu_custom_call.1
= control target key start
LH: loop header
LB: loop body
LE: loop exit
PB: predicated region body
PF: predicated region fallthrough
CT: control target
= control target key end

     0   :  { %s1570_s0 = inlined_call_operand.vmem [shape: bf16[2,16,256], index: 0, kind: input, shape index: {}]   ;;  %s1571_s1 = inlined_call_operand.vmem [shape: bf16[2,16,256], index: 1, kind: input, shape index: {}]   ;;  %s1572_s2 = inlined_call_operand.hbm [shape: bf16[2,16,256], index: 2, kind: input, shape index: {}]   ;;  %s1573_s3 = inlined_call_operand.vmem [shape: f32[2,16,1], index: 3, kind: input, shape index: {}]   ;;  %s1574_s4 = inlined_call_operand.vmem [shape: s32[2,16,1], index: 4, kind: input, shape index: {}]   ;;  %s1575_s5 = inlined_call_operand.hbm [shape: f32[2,1,128], index: 5, kind: output, shape index: {0}]   ;;  %s1576_s6 = inlined_call_operand.hbm [shape: f32[2,1,128], index: 6, kind: output, shape index: {1}]   ;;  %s1577_s7 = inlined_call_operand.hbm [shape: f32[2,1,128], index: 7, kind: output, shape index: {2}]  }
   0x1   :  { %1590 = sst [smem:[#allocation24_spill]] %s1572_s2 }
   0x2   :  { %1591 = sst [smem:[#allocation25_spill]] %s1576_s6 }
   0x3   :  { %1592 = sst [smem:[#allocation26_spill]] %s1577_s7 }
   0x4   :  { %13 = vsyncpa [#allocation3], 0 }
   0x5   :  { %15 = vsyncpa [#allocation3 + $0x1], 0 }
   0x6   :  { %16 = vsyncpa [#allocation4], 0 }
   0x7   :  { %18 = vsyncpa [#allocation4 + $0x1], 0 }
   0x8   :  { %19 = vsyncpa [#allocation7], 0 }
   0x9   :  { %21 = vsyncpa [#allocation7 + $0x1], 0  ;;  %s1302_s24 = smov 0   ;;  %s1304_s25 = smov 0  }
   0xa   :  { %s1306_s26 = smov 0   ;;  %s1308_s27 = smov 0  }
   0xb   :  { %s1310_s28 = smov 0   ;;  %s1312_s29 = smov 0  }
   0xc   :  { %s1314_s30 = smov 0   ;;  %s1316_s8 = smov 0  }
   0xd   :  { %s1318_s9 = smov 0   ;;  %s1320_s10 = smov 0  }
   0xe   :  { %s1322_s11 = smov 0  }
   0xf LB: > { %1593 = sst [smem:[#allocation12_spill]] %s1221_s25  ;;  %s1356_s12 = sadd.s32 4294967295, %s1257_s11   ;;  %s1257_s11 = sphi %s1322_s11, %s27_s11   ;;  %s1253_s10 = sphi %s1320_s10, %s1627_s10   ;;  %s1249_s9 = sphi %s1318_s9, %s1626_s9   ;;  %s1245_s8 = sphi %s1316_s8, %s1625_s8   ;;  %s1241_s30 = sphi %s1314_s30, %s1624_s30   ;;  %s1237_s29 = sphi %s1312_s29, %s1623_s29   ;;  %s1233_s28 = sphi %s1310_s28, %s1622_s28   ;;  %s1229_s27 = sphi %s1308_s27, %s1621_s27   ;;  %s1225_s26 = sphi %s1306_s26, %s1620_s26   ;;  %s1221_s25 = sphi %s1304_s25, %s1619_s25   ;;  %s1217_s24 = sphi %s1302_s24, %s1618_s24  }
  0x10   : > { %1594 = sst [smem:[#allocation13_spill]] %s1225_s26  ;;  %s36_s14 = sadd.s32 1, %s1249_s9 }
  0x11   : > { %1595 = sst [smem:[#allocation14_spill]] %s1233_s28  ;;  %s39_s15 = sadd.s32 1, %s1253_s10 }
  0x12   : > { %1596 = sst [smem:[#allocation15_spill]] %s1237_s29  ;;  %p37_p0 = scmp.ge.s32.totalorder %s36_s14, 2 }
  0x13   : > { %1597 = sst [smem:[#allocation16_spill]] %s1249_s9  ;;  %s104_s16 = sadd.s32 1, %s1237_s29 }
  0x14   : > { %1598 = sst [smem:[#allocation17_spill]] %s1253_s10  ;;  %p111_p1 = scmp.ne.s32.totalorder %s1237_s29, %s1233_s28 }
  0x15   : > { %1599 = sst [smem:[#allocation18_spill]] %s1356_s12  ;;  %p112_p2 = scmp.eq.s32.totalorder %s1257_s11, 0 }
  0x16   : > { %s1629_s14 = smov (%p37_p0, %s36_s14), 0  ;;  %s1631_s15 = smov (!%p37_p0, %s39_s15), %s1253_s10 }
  0x17   : > { %1600 = sst [smem:[#allocation19_spill]] %s1629_s14  ;;  %s100_s17 = ssub.s32 %s1249_s9, %s1629_s14 }
  0x18   : > { %p1370_p3 = por %p112_p2, %p111_p1  ;;  %p41_p4 = scmp.ge.s32.totalorder %s1631_s15, 2 }
  0x19   : > { %p117_p5 = scmp.ne.s32.totalorder %s1233_s28, %s1229_s27  ;;  %p118_p6 = scmp.eq.s32.totalorder %s1356_s12, 0 }
  0x1a   : > { %s186_s19 = sadd.s32 1, %s1225_s26  ;;  %s1633_s15 = smov (%p41_p4, %s1631_s15), 0 }
  0x1b   : > { %1602 = sst [smem:[#allocation20_spill]] %s1633_s15  ;;  %p1379_p7 = por %p118_p6, %p117_p5 }
  0x1c   : > { %p196_p8 = scmp.ne.s32.totalorder %s1225_s26, %s1221_s25  ;;  %s99_s21 = ssub.s32 %s1253_s10, %s1633_s15 }
  0x1d   : > { %p197_p9 = scmp.eq.s32.totalorder %s1356_s12, 3  ;;  %s101_s22 = sor.u32 %s100_s17, %s99_s21 }
  0x1e   : > { %p184_p10 = scmp.eq.s32.totalorder %s99_s21, 0  ;;  %p102_p11 = scmp.eq.s32.totalorder %s101_s22, 0 }
  0x1f   : > { %p1388_p12 = por %p197_p9, %p196_p8  ;;  %p202_p13 = scmp.ne.s32.totalorder %s1221_s25, %s1217_s24 }
  0x20   : > { %s1393_s27 = scalar_select %p184_p10, %s1225_s26, %s186_s19  }
  0x21   : > { %s1396_s13 = scalar_select %p102_p11, %s1237_s29, %s104_s16  }
  0x22   : > { %1605 = sst [smem:[#allocation21_spill]] %s1393_s27  ;;  %s1607_s14 = sadd.s32 4294967294, %s1257_s11  }
  0x23   : > { %1606 = sst [smem:[#allocation22_spill]] %s1396_s13  ;;  %p203_p0 = scmp.eq.s32.totalorder %s1607_s14, 3 }
  0x24   : > { %p925_p1 = scmp.lt.s32.totalorder %s1257_s11, 4  ;;  %s299_s17 = sand.u32 1, %s1237_s29  }
  0x25   : > { %p1403_p2 = por %p203_p0, %p202_p13  ;;  %s877_s21 = sshll.u32 %s299_s17, 3 }
  0x26   : > { %s878_s22 = sshll.u32 %s1249_s9, 1  ;;  %s879_s7 = sshll.u32 %s1253_s10, 2 }
  0x27   : > { %s1608_s15 = scalar_select %p1403_p2, 1, 0 }
  0x28   : > { %s303_s6 = scalar_lea.vmem [#allocation2], %s877_s21  ;;  %s308_s19 = sadd.s32 %s879_s7, %s878_s22 }
  0x29   : > { %1609 = sst [smem:[#allocation23_spill]] %s1608_s15  ;;  %s314_s12 = sshll.u32 %s303_s6, 4  ;;  %s315_s12 = int_to_ptr.vmem [resolvable:$true] %s314_s12 }
  0x2a   : > { %s880_s16 = sshll.u32 %s308_s19, 2  ;;  %p912_p4 = pnand %p925_p1, %p1370_p3 }
  0x2b   : > { %s1610_s2 = sld [smem:[#allocation24_spill]]  ;;  %p881_p5 = scmp.ge.s32.totalorder %s1257_s11, 1 }
  0x2c   : > { %p341_p6 = scmp.lt.s32.totalorder %s1257_s11, 5  ;;  %s300_s15 = scalar_lea.sflag [#allocation3], %s299_s17 }
  0x2e   : > { %p342_p8 = pnand %p881_p5, %p341_p6 }
  0x2f   : > { %s347_s6 = sand.u32 (!%p342_p8), 1, %s1233_s28  }
  0x30   : > { %345 = sbr.rel (%p342_p8) target bundleno = 658 (0x292), region = 40  ;;  %s1418_s7 = sshll.u32 (!%p342_p8), %s347_s6, 3 }
  0x31   : > { %s310_s14 = scalar_lea.hbm %s1610_s2, %s880_s16  ;;  %s348_s18 = scalar_lea.sflag (!%p342_p8), [#allocation3], %s347_s6 }
  0x32   : > { %s312_s26 = sshll.u32 %s310_s14, 4  ;;  %s313_s26 = int_to_ptr.hbm [resolvable:$true] %s312_s26 }
  0x33   : > { %914 = dma.hbm_to_vmem [thread:$0]  (!%p912_p4), %s313_s26, 128, %s315_s12, %s300_s15  }
  0x35   : > { %1204 = dma.done.wait (%p1379_p7), %s348_s18, 128  }
  0x36   : > { %1206 = vsyncadd (%p1379_p7), %s348_s18, 4294967168  ;;  %s1426_s26 = sand.u32 1, %s1221_s25   ;;  %p424_p3 = scmp.lt.s32.totalorder %s1245_s8, 1 }
  0x37   : > { %p426_p9 = scmp.lt.s32.totalorder %s1241_s30, 1  ;;  %p893_p7 = scmp.ne.s32.totalorder %s1241_s30, 0 }
  0x38   : > { %s425_s12 = scalar_select %p424_p3, %s1245_s8, 1 }
  0x39   : > { %s427_s13 = scalar_select %p426_p9, %s1241_s30, 1 }
  0x3a   : > { %s884_s15 = sshll.u32 %s425_s12, 2  ;;  %s889_s27 = sshll.u32 %s425_s12, 1 }
  0x3b   : > { %s883_s17 = sshll.u32 %s427_s13, 1  ;;  %s447_s22 = sadd.s32 %s889_s27, %s427_s13 }
  0x3c   : > { %s430_s20 = sadd.s32 %s884_s15, %s883_s17  ;;  %s890_s19 = sshll.u32 %s447_s22, 3 }
  0x3d   : > { %s885_s16 = sshll.u32 %s430_s20, 2  ;;  %s1435_s18 = scalar_lea.vmem %s1573_s3, %s890_s19 }
  0x3e   : > { %s432_s10 = scalar_lea.vmem %s1570_s0, %s885_s16  ;;  %s441_s28 = scalar_lea.vmem %s1571_s1, %s885_s16 }
  0x3f   : > { %s457_s13 = scalar_lea.vmem %s1574_s4, %s890_s19  ;;  %s1447_s15 = scalar_lea.vmem [#allocation5], %s1426_s26 }
  0x40   : > { %s1450_s27 = scalar_lea.vmem [#allocation6], %s1426_s26  ;;  %s1453_s17 = scalar_lea.vmem [#allocation8], %s1426_s26 }
  0x41   : > { %461 = sbr.rel (%p893_p7) target bundleno = 74 (0x4a), region = 48 }
  0x46   : > { %v1259_v0 = vmov 0.0  }
  0x47   : > { %462 = vst [vmem:[%s1447_s15] sm:$0x1] %v1259_v0 }
  0x48   : > { %463 = vst [vmem:[%s1450_s27] sm:$0x1] %v1259_v0 }
  0x49   : > { %464 = vst [vmem:[%s1453_s17] sm:$0x1] %v1259_v0 }
  0x4a PF: > { %v468_v1 = vld [vmem:[%s441_s28] sm:$0xff]  ;;  %v1260_v7 = vmov 0   ;;  %s1611_s2 = scalar_lea.vmem [#allocation2], %s1418_s7  ;;  %v574_v17 = vlaneseq  ;;  %v1261_v57 = vmov 0.0   ;;  %vm563_vm3 = vcmask 7168   ;;  %s632_s29 = scalar_lea.hbm %s1575_s5, %s1245_s8 }
  0x4b   : > { %v465_v2 = vld [vmem:[%s432_s10] sm:$0xff]  ;;  %v469_v3 = vunpack.c.l.bf16 %v468_v1  ;;  %v470_v4 = vunpack.c.h.bf16 %v468_v1  ;;  %1018 = vset.pattern.permute.xlu2 %v1260_v7  ;;  %1019 = vset.pattern.permute.xlu1 %v1260_v7  ;;  %s634_s30 = sshll.u32 %s1447_s15, 4  ;;  %s636_s9 = sshll.u32 %s632_s29, 4  ;;  %s635_s30 = int_to_ptr.vmem [resolvable:$true] %s634_s30  ;;  %s637_s9 = int_to_ptr.hbm [resolvable:$true] %s636_s9 }
  0x4c   : > { %v466_v5 = vunpack.c.l.bf16 %v465_v2  ;;  %v467_v6 = vunpack.c.h.bf16 %v465_v2  ;;  %v1459_v8 = vld [vmem:[%s457_s13] sm:$0xff]  ;;  %1020 = vset.pattern.permute.xlu0 %v1260_v7  ;;  %v575_v26 = vand.u32 127, %v574_v17  ;;  %s616_s7 = scalar_lea.sflag [#allocation4], %s1426_s26  ;;  %s1089_s21 = sshra.s32 %s637_s9, 4  ;;  %s1090_s21 = int_to_ptr.hbm [resolvable:$true] %s1089_s21 }
  0x4d   : > { %v471_v9 = vld [vmem:[%s1611_s2] sm:$0xff]  ;;  %578 = vperm.xlu2 %1018, %v1459_v8   ;;  %v490_v10 = vmax.f32 %v469_v3, %v470_v4  ;;  %vm587_vm2 = vcmp.ge.s32.totalorder %v1459_v8, 0  ;;  %s1091_s22 = scalar_lea.hbm %s1090_s21, 1  ;;  %s1095_s16 = scalar_lea.hbm %s1575_s5, 2 }
  0x4e   : > { %v476_v11 = vmax.f32 %v466_v5, %v467_v6  ;;  %v472_v12 = vunpack.c.l.bf16 %v471_v9  ;;  %v473_v13 = vunpack.c.h.bf16 %v471_v9  ;;  %v576_v30 = vadd.s32 128, %v575_v26  ;;  %v474_v46 = vld [vmem:[%s1435_s18] sm:$0xff]  ;;  %p1092_p10 = scmp.ne.s32.totalorder %s1090_s21, %s1091_s22  ;;  %p1096_p0 = scmp.lt.s32.totalorder %s1090_s21, %s1575_s5 }
  0x4f   : > { %491 = vmax.xlane.f32.xlu0 %v490_v10  ;;  %v894_v58 = vsel %vm587_vm2, 1.0, %v1261_v57  ;;  %p1097_p1 = scmp.lt.s32.totalorder %s1095_s16, %s1091_s22 }
  0x50   : > { %477 = vmax.xlane.f32.xlu1 %v476_v11  ;;  %v511_v14 = vmax.f32 %v472_v12, %v473_v13  ;;  %p1093_p11 = pnand %p1092_p10, %p1388_p12 }
  0x51   : > { %p1098_p4 = por %p1097_p1, %p1096_p0 }
  0x52   : > { %p1094_p13 = pneg %p1093_p11 }
  0x54   : > { %p1099_p5 = pnand %p1098_p4, %p1094_p13 }
  0x57   : > { %512 = vmax.xlane.f32.xlu0 %v511_v14 }
  0xa7   : > { %v579_v31 = vpop.permute.xlu2 %578 }
  0xa8   : > { %vm580_vm0 = vcmp.eq.s32.totalorder %v575_v26, %v579_v31  ;;  %vm581_vm1 = vcmp.eq.s32.totalorder %v576_v30, %v579_v31 }
  0xc2   : > { %v492_v15 = vpop.xlane.xlu0 %491 }
  0xc3   : > { %v478_v16 = vpop.xlane.xlu1 %477  ;;  %v1464_v18 = vsub.f32 %v469_v3, %v492_v15  ;;  %v1466_v19 = vsub.f32 %v470_v4, %v492_v15 }
  0xc4   : > { %v479_v20 = vsub.f32 %v466_v5, %v478_v16  ;;  %v480_v21 = vsub.f32 %v467_v6, %v478_v16 }
  0xc5   : > { %v495_v22 = vmul.f32 1.442695, %v1464_v18  ;;  %v497_v23 = vmul.f32 1.442695, %v1466_v19 }
  0xc6   : > { %v481_v24 = vmul.f32 1.442695, %v479_v20  ;;  %v483_v25 = vmul.f32 1.442695, %v480_v21  ;;  %v582_v40 = vsel %vm580_vm0, %v479_v20, 0.0  ;;  %v583_v41 = vsel %vm581_vm1, %v480_v21, 0.0 }
  0xc7   : > { %1021 = vpow2.f32 %v495_v22  ;;  %v584_v43 = vadd.f32 %v583_v41, %v582_v40 }
  0xc8   : > { %1023 = vpow2.f32 %v497_v23 }
  0xc9   : > { %1025 = vpow2.f32 %v481_v24 }
  0xca   : > { %1027 = vpow2.f32 %v483_v25  ;;  %v513_v27 = vpop.xlane.xlu0 %512 }
  0xcb   : > { %v514_v28 = vsub.f32 %v472_v12, %v513_v27  ;;  %v515_v29 = vsub.f32 %v473_v13, %v513_v27 }
  0xcd   : > { %v1022_v32 = vpop.eup %1021  ;;  %v516_v33 = vmul.f32 1.442695, %v514_v28  ;;  %v518_v34 = vmul.f32 1.442695, %v515_v29 }
  0xce   : > { %v1024_v35 = vpop.eup %1023 }
  0xcf   : > { %v1026_v36 = vpop.eup %1025  ;;  %1029 = vpow2.f32 %v516_v33  ;;  %v499_v37 = vadd.f32 %v1024_v35, %v1022_v32 }
  0xd0   : > { %v1028_v38 = vpop.eup %1027  ;;  %1031 = vpow2.f32 %v518_v34 }
  0xd1   : > { %500 = vadd.xlane.f32.xlu1 %v499_v37  ;;  %v485_v39 = vadd.f32 %v1028_v38, %v1026_v36  ;;  %v603_v38 = vld [vmem:[%s1447_s15] sm:$0x1] }
  0xd3   : > { %486 = vadd.xlane.f32.xlu0 %v485_v39 }
  0xd5   : > { %v1030_v42 = vpop.eup %1029 }
  0xd6   : > { %v1032_v44 = vpop.eup %1031 }
  0xd7   : > { %v520_v45 = vadd.f32 %v1032_v44, %v1030_v42 }
  0xd9   : > { %521 = vadd.xlane.f32.xlu2 %v520_v45  ;;  %585 = vadd.xlane.f32.xlu1 %v584_v43 }
  0xf2   : > { %538 = vperm.xlu1 %1019, %v474_v46  }
 0x144   : > { %v501_v47 = vpop.xlane.xlu1 %500 }
 0x145   : > { %1033 = vrcp.f32 %v501_v47 }
 0x146   : > { %v487_v48 = vpop.xlane.xlu0 %486 }
 0x147   : > { %1035 = vlog2.f32 %v487_v48 }
 0x14b   : > { %v1034_v49 = vpop.eup %1033 }
 0x14c   : > { %v553_v50 = vmul.f32 %v1034_v49, %v501_v47  ;;  %v522_v51 = vpop.xlane.xlu2 %521  ;;  %v507_v52 = vmul.f32 %v1034_v49, %v1022_v32  ;;  %v508_v53 = vmul.f32 %v1034_v49, %v1024_v35  ;;  %v586_v60 = vpop.xlane.xlu1 %585 }
 0x14d   : > { %v1036_v54 = vpop.eup %1035  ;;  %1037 = vrcp.f32 %v522_v51 }
 0x14e   : > { %v489_v55 = vmul.f32 0.6931472, %v1036_v54  ;;  %v509_v56 = vadd.f32 1e-07, %v507_v52  ;;  %v510_v59 = vadd.f32 1e-07, %v508_v53  ;;  %1039 = vlog2.f32 %v501_v47 }
 0x14f   : > { %v554_v25 = vadd.f32 2.56e-05, %v553_v50 }
 0x150   : > { %v555_v61 = vmul.f32 %v509_v56, %v479_v20  ;;  %v590_v62 = vsub.f32 %v489_v55, %v586_v60  ;;  %v556_v63 = vmul.f32 %v510_v59, %v480_v21 }
 0x151   : > { %v560_v26 = vmul.f32 %v554_v25, %v489_v55 }
 0x152   : > { %v591_v0 = vmul.f32 %v894_v58, %v590_v62  ;;  %v557_v2 = vadd.f32 %v556_v63, %v555_v61 }
 0x153   : > { %v1038_v1 = vpop.eup %1037 }
 0x154   : > { %v524_v3 = vmul.f32 %v1038_v1, %v1030_v42  ;;  %v525_v4 = vmul.f32 %v1038_v1, %v1032_v44  ;;  %558 = vadd.xlane.f32.xlu0 %v557_v2  ;;  %v1040_v7 = vpop.eup %1039 }
 0x155   : > { %v504_v8 = vmul.f32 0.6931472, %v1040_v7 }
 0x156   : > { %v526_v5 = vadd.f32 1e-07, %v524_v3  ;;  %v527_v6 = vadd.f32 1e-07, %v525_v4 }
 0x157   : > { %v505_v11 = vsub.f32 %v1464_v18, %v504_v8  ;;  %v506_v13 = vsub.f32 %v1466_v19, %v504_v8  ;;  %v592_v19 = vmul.f32 %v591_v0, %v474_v46 }
 0x158   : > { %1041 = vlog2.f32 %v526_v5 }
 0x159   : > { %1043 = vlog2.f32 %v527_v6  ;;  %v593_v30 = vsel %vm563_vm3, %v592_v19, 0.0 }
 0x15e   : > { %v1042_v9 = vpop.eup %1041 }
 0x15f   : > { %v1044_v10 = vpop.eup %1043  ;;  %v529_v12 = vmul.f32 0.6931472, %v1042_v9 }
 0x160   : > { %v531_v14 = vmul.f32 0.6931472, %v1044_v10 }
 0x161   : > { %v532_v15 = vsub.f32 %v529_v12, %v505_v11 }
 0x162   : > { %v533_v16 = vsub.f32 %v531_v14, %v506_v13 }
 0x163   : > { %v534_v17 = vmul.f32 %v532_v15, %v526_v5 }
 0x164   : > { %v535_v20 = vmul.f32 %v533_v16, %v527_v6  ;;  %v539_v21 = vpop.permute.xlu1 %538 }
 0x165   : > { %v541_v22 = vmul.f32 %v539_v21, %v534_v17 }
 0x166   : > { %v542_v23 = vmul.f32 %v539_v21, %v535_v20 }
 0x168   : > { %v543_v24 = vadd.f32 %v542_v23, %v541_v22 }
 0x16a   : > { %544 = vadd.xlane.f32.xlu0 %v543_v24 }
 0x1c7   : > { %v559_v27 = vpop.xlane.xlu0 %558 }
 0x1c8   : > { %v561_v28 = vsub.f32 %v559_v27, %v560_v26 }
 0x1ca   : > { %v562_v29 = vmul.f32 %v561_v28, %v474_v46 }
 0x1cc   : > { %v564_v18 = vsel %vm563_vm3, %v562_v29, 0.0 }
 0x1cd   : > { %565 = vadd.xlane.f32.xlu0 %v564_v18 }
 0x1d5   : > { %594 = vadd.xlane.f32.xlu0 %v593_v30 }
 0x1dd   : > { %v545_v31 = vpop.xlane.xlu0 %544 }
 0x1de   : > { %v546_v32 = vrot.slane %v545_v31, 4 }
 0x1e0   : > { %v547_v33 = vadd.f32 %v546_v32, %v545_v31 }
 0x1e2   : > { %v548_v34 = vrot.slane %v547_v33, 2 }
 0x1e4   : > { %v549_v35 = vadd.f32 %v548_v34, %v547_v33 }
 0x1e6   : > { %v550_v36 = vrot.slane %v549_v35, 1 }
 0x1e8   : > { %v551_v37 = vadd.f32 %v550_v36, %v549_v35 }
 0x1ea   : > { %897 = vpush %v551_v37 }
 0x21b   : > { %s898_s10 = spop %897 }
 0x21c   : > { %v604_v39 = vstv %s898_s10 }
 0x21d   : > { %v605_v40 = vadd.f32 %v604_v39, %v603_v38 }
 0x21f   : > { %606 = vst [vmem:[%s1447_s15] sm:$0x1] %v605_v40 }
 0x220   : > { %1102 = shalt.err (!%p1099_p5)
}
 0x221   : > { %905 = dma.vmem_to_hbm [thread:$0]  (%p1388_p12), %s635_s30, 16, %s637_s9, %s616_s7   ;;  %v607_v55 = vld [vmem:[%s1450_s27] sm:$0x1] }
 0x222   : > { %s1612_s26 = sld [smem:[#allocation18_spill]]  ;;  %s647_s25 = sshll.u32 %s1450_s27, 4  ;;  %s648_s25 = int_to_ptr.vmem [resolvable:$true] %s647_s25 }
 0x223   : > { %s1613_s13 = sld [smem:[#allocation25_spill]] }
 0x224   : > { %s1614_s10 = sld [smem:[#allocation26_spill]] }
 0x228   : > { %s619_s2 = sand.u32 1, %s1612_s26  }
 0x229   : > { %s645_s15 = scalar_lea.hbm %s1613_s13, %s1245_s8  ;;  %s1504_s22 = scalar_lea.sflag [#allocation7], %s619_s2 }
 0x22a   : > { %s649_s28 = sshll.u32 %s645_s15, 4  ;;  %s1615_s7 = smov %s1614_s10  ;;  %s650_s28 = int_to_ptr.hbm [resolvable:$true] %s649_s28 }
 0x22b   : > { %s658_s21 = scalar_lea.hbm %s1614_s10, %s1245_s8  ;;  %s1117_s20 = sshra.s32 %s650_s28, 4  ;;  %s1118_s20 = int_to_ptr.hbm [resolvable:$true] %s1117_s20 }
 0x22c   : > { %s1119_s19 = scalar_lea.hbm %s1118_s20, 1  ;;  %s1123_s6 = scalar_lea.hbm %s1613_s13, 2 }
 0x22d   : > { %p1120_p6 = scmp.ne.s32.totalorder %s1118_s20, %s1119_s19  ;;  %p1124_p9 = scmp.lt.s32.totalorder %s1118_s20, %s1613_s13 }
 0x22e   : > { %p1125_p7 = scmp.lt.s32.totalorder %s1123_s6, %s1119_s19 }
 0x22f   : > { %p1121_p8 = pnand %p1120_p6, %p1388_p12 }
 0x230   : > { %p1126_p10 = por %p1125_p7, %p1124_p9 }
 0x231   : > { %p1122_p3 = pneg %p1121_p8 }
 0x233   : > { %p1127_p11 = pnand %p1126_p10, %p1122_p3 }
 0x240   : > { %v566_v41 = vpop.xlane.xlu0 %565 }
 0x241   : > { %v567_v42 = vrot.slane %v566_v41, 4 }
 0x243   : > { %v568_v43 = vadd.f32 %v567_v42, %v566_v41 }
 0x245   : > { %v569_v44 = vrot.slane %v568_v43, 2 }
 0x247   : > { %v570_v45 = vadd.f32 %v569_v44, %v568_v43 }
 0x248   : > { %v595_v46 = vpop.xlane.xlu0 %594 }
 0x249   : > { %v596_v47 = vrot.slane %v595_v46, 4  ;;  %v571_v48 = vrot.slane %v570_v45, 1 }
 0x24b   : > { %v597_v49 = vadd.f32 %v596_v47, %v595_v46  ;;  %v572_v50 = vadd.f32 %v571_v48, %v570_v45 }
 0x24d   : > { %v598_v51 = vrot.slane %v597_v49, 2  ;;  %899 = vpush %v572_v50 }
 0x24f   : > { %v599_v52 = vadd.f32 %v598_v51, %v597_v49 }
 0x251   : > { %v600_v53 = vrot.slane %v599_v52, 1 }
 0x253   : > { %v601_v54 = vadd.f32 %v600_v53, %v599_v52 }
 0x255   : > { %901 = vpush %v601_v54 }
 0x27e   : > { %s900_s29 = spop %899 }
 0x27f   : > { %v608_v56 = vstv %s900_s29 }
 0x280   : > { %v609_v57 = vadd.f32 %v608_v56, %v607_v55 }
 0x282   : > { %610 = vst [vmem:[%s1450_s27] sm:$0x1] %v609_v57 }
 0x283   : > { %1130 = shalt.err (!%p1127_p11)
}
 0x284   : > { %906 = dma.vmem_to_hbm [thread:$0]  (%p1388_p12), %s648_s25, 16, %s650_s28, %s1504_s22   ;;  %v611_v58 = vld [vmem:[%s1453_s17] sm:$0x1] }
 0x285   : > { %s660_s8 = sshll.u32 %s1453_s17, 4  ;;  %s662_s27 = sshll.u32 %s658_s21, 4  ;;  %s661_s8 = int_to_ptr.vmem [resolvable:$true] %s660_s8  ;;  %s663_s27 = int_to_ptr.hbm [resolvable:$true] %s662_s27 }
 0x286   : > { %s902_s12 = spop %901  ;;  %s1145_s15 = sshra.s32 %s663_s27, 4  ;;  %s1146_s15 = int_to_ptr.hbm [resolvable:$true] %s1145_s15 }
 0x287   : > { %v612_v59 = vstv %s902_s12  ;;  %s1147_s2 = scalar_lea.hbm %s1146_s15, 1  ;;  %s1151_s25 = scalar_lea.hbm %s1615_s7, 2 }
 0x288   : > { %v613_v60 = vadd.f32 %v612_v59, %v611_v58  ;;  %p1148_p13 = scmp.ne.s32.totalorder %s1146_s15, %s1147_s2  ;;  %p1152_p4 = scmp.lt.s32.totalorder %s1146_s15, %s1615_s7 }
 0x289   : > { %p1153_p5 = scmp.lt.s32.totalorder %s1151_s25, %s1147_s2 }
 0x28a   : > { %614 = vst [vmem:[%s1453_s17] sm:$0x1] %v613_v60  ;;  %p1149_p0 = pnand %p1148_p13, %p1388_p12 }
 0x28b   : > { %p1154_p6 = por %p1153_p5, %p1152_p4 }
 0x28c   : > { %p1150_p1 = pneg %p1149_p0 }
 0x28e   : > { %p1155_p8 = pnand %p1154_p6, %p1150_p1 }
 0x290   : > { %1158 = shalt.err (!%p1155_p8)
}
 0x291   : > { %907 = dma.vmem_to_hbm [thread:$0]  (%p1388_p12), %s661_s8, 16, %s663_s27, %s1504_s22  }
 0x292 PF: > { %p926_p3 = scmp.ge.s32.totalorder %s1257_s11, 2  ;;  %s674_s10 = sand.u32 1, %s1217_s24  }
 0x293   : > { %s675_s21 = scalar_lea.sflag [#allocation4], %s674_s10 }
 0x294   : > { %p916_p9 = pnand %p926_p3, %p1403_p2 }
 0x296   : > { %p917_p7 = pneg %p916_p9 }
 0x298   : > { %1208 = dma.done.wait (%p917_p7), %s675_s21, 16  }
 0x299   : > { %1210 = vsyncadd (%p917_p7), %s675_s21, 4294967280  ;;  %s1617_s20 = sadd.s32 4294967294, %s1257_s11  }
 0x29a   : > { %s683_s19 = sand.u32 1, %s1617_s20  }
 0x29b   : > { %s684_s16 = scalar_lea.sflag [#allocation7], %s683_s19 }
 0x29c   : > { %1212 = dma.done.wait (%p917_p7), %s684_s16, 32  }
 0x29d   : > { %1214 = vsyncadd (%p917_p7), %s684_s16, 4294967264  ;;  %s27_s11 = sadd.s32 1, %s1257_s11   ;;  %s1618_s24 = sld [smem:[#allocation12_spill]] }
 0x29e   : > { %p24_p12 = scmp.ge.s32.totalorder %s27_s11, 6   ;;  %s1619_s25 = sld [smem:[#allocation13_spill]] }
 0x29f   : > { %s1620_s26 = sld [smem:[#allocation21_spill]] }
 0x2a0   : > { %s1621_s27 = sld [smem:[#allocation14_spill]] }
 0x2a1   : > { %s1622_s28 = sld [smem:[#allocation15_spill]] }
 0x2a2   : > { %s1623_s29 = sld [smem:[#allocation22_spill]]  ;;  %26 = sbr.rel (!%p24_p12) target bundleno = 15 (0xf), region = 133 }
 0x2a3   : > { %s1624_s30 = sld [smem:[#allocation16_spill]] }
 0x2a4   : > { %s1625_s8 = sld [smem:[#allocation17_spill]] }
 0x2a5   : > { %s1626_s9 = sld [smem:[#allocation19_spill]] }
 0x2a6   : > { %s1627_s10 = sld [smem:[#allocation20_spill]] }
 0x2a7   :  { %698 = vsyncpa [#allocation3], 1 }
 0x2a8   :  { %700 = vsyncpa [#allocation3 + $0x1], 1 }
 0x2a9   :  { %701 = vsyncpa [#allocation4], 1 }
 0x2aa   :  { %703 = vsyncpa [#allocation4 + $0x1], 1 }
 0x2ab   :  { %704 = vsyncpa [#allocation7], 1 }
 0x2ac   :  { %706 = vsyncpa [#allocation7 + $0x1], 1 }

</bundles_post_ra>
